<compile_context>
chip_gen: v6e
topology: v6e:2x2x1
jax: 0.10.0
libtpu: 0.0.40
codegen_flags: <defaults>
</compile_context>

<pallas_src>
import jax
import jax.numpy as jnp
from jax.experimental import pallas as pl
from jax.experimental.pallas import tpu as pltpu


def _ce_kernel(logits_ref, tgt_ref, mask_ref, out_ref, num_acc, den_acc):
    # logits_ref: (1, tT, V) native dtype   tgt_ref: (1, tT, 1) i32
    # mask_ref:   (1, tT, 1) f32            out_ref: (1, 1, 1) f32
    # num_acc/den_acc: (1, 1) f32 VMEM scratch, persistent across the grid.
    t = pl.program_id(1)
    n_t = pl.num_programs(1)

    @pl.when(t == 0)
    def _init():
        num_acc[...] = jnp.zeros_like(num_acc)
        den_acc[...] = jnp.zeros_like(den_acc)

    # upcast in-kernel (native-dtype DMA; all math in f32 -> v5e-safe too)
    logits = logits_ref[0].astype(jnp.float32)          # (tT, V)
    tgt = tgt_ref[0]                                     # (tT, 1) int32
    mask = mask_ref[0]                                   # (tT, 1) f32
    tT, V = logits.shape

    # numerically-stable log-sum-exp over the vocab (lane) axis
    m = jnp.max(logits, axis=-1, keepdims=True)                          # (tT, 1)
    lse = jnp.log(jnp.sum(jnp.exp(logits - m), axis=-1, keepdims=True))  # (tT, 1)

    # target logit via masked lane reduction (no f32 one-hot, no lprobs tensor)
    iota = jax.lax.broadcasted_iota(jnp.int32, (tT, V), 1)               # (tT, V)
    tgt_logit = jnp.sum(jnp.where(iota == tgt, logits, 0.0),
                        axis=-1, keepdims=True)                          # (tT, 1)

    # -log_softmax(logits)[target] = (m + lse) - logits[target]
    nll = (m + lse) - tgt_logit                                          # (tT, 1)

    num_acc[...] = num_acc[...] + jnp.sum(nll * mask, keepdims=True)
    den_acc[...] = den_acc[...] + jnp.sum(mask, keepdims=True)

    @pl.when(t == n_t - 1)
    def _finalize():
        # per-sequence masked mean NLL (matches PyTorch: no zero-mask guard)
        out_ref[0] = num_acc[...] / den_acc[...]


def _choose_tile_t(T, V, itemsize):
    """Largest T-tile that divides T, is a multiple of 16 (sublane-legal for
    both f32 and bf16 blocks), and keeps one logits buffer under ~8 MiB so the
    double-buffered pipeline fits the default 32 MiB scoped VMEM on every TPU
    generation (safe for v7x's 64 MiB physical VMEM; v5e/v6e have headroom to
    go larger if profiling warrants raising vmem_limit_bytes)."""
    budget_rows = max(1, (8 * 1024 * 1024) // max(1, V * itemsize))
    best = None
    t = 16
    while t <= T:
        if T % t == 0 and t <= budget_rows:
            best = t
        t += 16
    if best is None:
        best = T  # full-extent block is always layout-legal (small T case)
    return best
    # TODO(synk): for very large vocabularies (V >= 64K) add a vocab grid axis
    # with an online (flash-style) log-sum-exp so the tile is tT x tV.


def cross_entropy_loss(logits, targets, target_mask=None, tile_t=None):
    """logits: [B, T, V] (f32 or bf16); targets: [B, T] int; target_mask: [B, T] or None."""
    B, T, V = logits.shape
    if target_mask is None:
        # nll.mean() over all tokens == per-row mean then batch mean (constant T)
        target_mask = jnp.ones((B, T), dtype=jnp.float32)

    if tile_t is None:
        tile_t = _choose_tile_t(T, V, jnp.dtype(logits.dtype).itemsize)
    assert T % tile_t == 0, (T, tile_t)
    n_t = T // tile_t

    tgt3 = targets.astype(jnp.int32).reshape(B, T, 1)
    mask3 = target_mask.astype(jnp.float32).reshape(B, T, 1)

    per_seq = pl.pallas_call(
        _ce_kernel,
        out_shape=jax.ShapeDtypeStruct((B, 1, 1), jnp.float32),
        grid=(B, n_t),
        in_specs=[
            pl.BlockSpec((1, tile_t, V), lambda b, t: (b, t, 0)),   # native dtype
            pl.BlockSpec((1, tile_t, 1), lambda b, t: (b, t, 0)),
            pl.BlockSpec((1, tile_t, 1), lambda b, t: (b, t, 0)),
        ],
        out_specs=pl.BlockSpec((1, 1, 1), lambda b, t: (b, 0, 0)),
        scratch_shapes=[
            pltpu.VMEM((1, 1), jnp.float32),   # num accumulator
            pltpu.VMEM((1, 1), jnp.float32),   # den accumulator
        ],
        compiler_params=pltpu.CompilerParams(
            dimension_semantics=("parallel", "arbitrary"),
        ),
    )(logits, tgt3, mask3)

    # final mean over the batch (tiny glue op, matches .mean() in the module)
    return jnp.mean(per_seq)


def _reference(logits, targets, target_mask=None):
    lprobs = jax.nn.log_softmax(logits.astype(jnp.float32), axis=-1)
    nll = -jnp.take_along_axis(lprobs, targets[..., None].astype(jnp.int32), axis=-1)[..., 0]
    if target_mask is not None:
        return jnp.mean(jnp.sum(nll * target_mask, -1) / jnp.sum(target_mask, -1))
    return jnp.mean(nll)


if __name__ == "__main__":
    key = jax.random.PRNGKey(0)
    k1, k2, k3 = jax.random.split(key, 3)

    # --- small shape, single T tile ---
    B, T, V = 2, 8, 128
    logits = jax.random.normal(k1, (B, T, V), dtype=jnp.float32)
    targets = jax.random.randint(k2, (B, T), 0, V, dtype=jnp.int32)
    target_mask = jax.random.bernoulli(k3, 0.7, (B, T)).astype(jnp.float32)
    target_mask = target_mask.at[:, 0].set(1.0)  # ensure at least one valid token per row

    loss = cross_entropy_loss(logits, targets, target_mask)
    jax.block_until_ready(loss)
    ref = _reference(logits, targets, target_mask)
    assert jnp.allclose(loss, ref, rtol=1e-5, atol=1e-5), (loss, ref)

    # mask=None path
    loss_nomask = cross_entropy_loss(logits, targets, None)
    jax.block_until_ready(loss_nomask)
    ref_nomask = _reference(logits, targets, None)
    assert jnp.allclose(loss_nomask, ref_nomask, rtol=1e-5, atol=1e-5), (loss_nomask, ref_nomask)

    # --- bf16 logits: exercises native-dtype DMA + in-kernel upcast ---
    logits_bf16 = logits.astype(jnp.bfloat16)
    loss_bf16 = cross_entropy_loss(logits_bf16, targets, target_mask)
    jax.block_until_ready(loss_bf16)
    ref_bf16 = _reference(logits_bf16.astype(jnp.float32), targets, target_mask)
    assert jnp.allclose(loss_bf16, ref_bf16, rtol=1e-4, atol=1e-4), (loss_bf16, ref_bf16)

    # --- larger T with explicit T tiling: exercises the accumulator path ---
    B2, T2, V2 = 2, 64, 256
    k4, k5, k6 = jax.random.split(jax.random.PRNGKey(1), 3)
    logits2 = jax.random.normal(k4, (B2, T2, V2), dtype=jnp.float32)
    targets2 = jax.random.randint(k5, (B2, T2), 0, V2, dtype=jnp.int32)
    mask2 = jax.random.bernoulli(k6, 0.7, (B2, T2)).astype(jnp.float32)
    mask2 = mask2.at[:, 0].set(1.0)

    loss2 = cross_entropy_loss(logits2, targets2, mask2, tile_t=16)  # grid (2, 4)
    jax.block_until_ready(loss2)
    ref2 = _reference(logits2, targets2, mask2)
    assert jnp.allclose(loss2, ref2, rtol=1e-5, atol=1e-5), (loss2, ref2)

    print("KERNEL_OK")
</pallas_src>

<mosaic_0001>
module attributes {stable_mosaic.version = 11 : i64} {
  func.func @_ce_kernel(%arg0: i32, %arg1: i32, %arg2: memref<1x8x128xf32, #tpu.memory_space<vmem>>, %arg3: memref<1x8x1xi32, #tpu.memory_space<vmem>>, %arg4: memref<1x8x1xf32, #tpu.memory_space<vmem>>, %arg5: memref<1x1x1xf32, #tpu.memory_space<vmem>>, %arg6: memref<1x1xf32, #tpu.memory_space<vmem>>, %arg7: memref<1x1xf32, #tpu.memory_space<vmem>>) attributes {dimension_semantics = [#tpu.dimension_semantics<parallel>, #tpu.dimension_semantics<arbitrary>], iteration_bounds = array<i64: 2, 1>, scalar_prefetch = 0 : i64, scratch_operands = 2 : i64, tpu.core_type = #tpu.core_type<tc>, window_params = [{transform_indices = @transform_0, window_bounds = array<i64: 1, 8, 128>}, {transform_indices = @transform_1, window_bounds = array<i64: 1, 8, 1>}, {transform_indices = @transform_2, window_bounds = array<i64: 1, 8, 1>}, {transform_indices = @transform_3, window_bounds = array<i64: 1, 1, 1>}]} {
    %c0_i32 = arith.constant 0 : i32
    %0 = arith.cmpi eq, %arg1, %c0_i32 : i32
    %1 = arith.extui %0 : i1 to i32
    %c0_i32_0 = arith.constant 0 : i32
    %2 = arith.cmpi ne, %1, %c0_i32_0 : i32
    scf.if %2 {
      %cst_24 = arith.constant 0.000000e+00 : f32
      %46 = vector.broadcast %cst_24 : f32 to vector<1x1xf32>
      %c0_25 = arith.constant 0 : index
      %c0_26 = arith.constant 0 : index
      %47 = vector.load %arg6[%c0_25, %c0_26] : memref<1x1xf32, #tpu.memory_space<vmem>>, vector<1x1xf32>
      tpu.vector_store %arg6[%c0_25, %c0_26], %46 {strides = array<i32>} : memref<1x1xf32, #tpu.memory_space<vmem>>, vector<1x1xf32>,
      %cst_27 = arith.constant 0.000000e+00 : f32
      %48 = vector.broadcast %cst_27 : f32 to vector<1x1xf32>
      %c0_28 = arith.constant 0 : index
      %c0_29 = arith.constant 0 : index
      %49 = vector.load %arg7[%c0_28, %c0_29] : memref<1x1xf32, #tpu.memory_space<vmem>>, vector<1x1xf32>
      tpu.vector_store %arg7[%c0_28, %c0_29], %48 {strides = array<i32>} : memref<1x1xf32, #tpu.memory_space<vmem>>, vector<1x1xf32>,
    } else {
    }
    %c0 = arith.constant 0 : index
    %c0_1 = arith.constant 0 : index
    %c0_2 = arith.constant 0 : index
    %3 = vector.load %arg2[%c0, %c0_1, %c0_2] : memref<1x8x128xf32, #tpu.memory_space<vmem>>, vector<1x8x128xf32>
    %4 = vector.shape_cast %3 : vector<1x8x128xf32> to vector<8x128xf32>
    %c0_3 = arith.constant 0 : index
    %c0_4 = arith.constant 0 : index
    %c0_5 = arith.constant 0 : index
    %5 = vector.load %arg3[%c0_3, %c0_4, %c0_5] : memref<1x8x1xi32, #tpu.memory_space<vmem>>, vector<1x8x1xi32>
    %6 = vector.shape_cast %5 : vector<1x8x1xi32> to vector<8x1xi32>
    %c0_6 = arith.constant 0 : index
    %c0_7 = arith.constant 0 : index
    %c0_8 = arith.constant 0 : index
    %7 = vector.load %arg4[%c0_6, %c0_7, %c0_8] : memref<1x8x1xf32, #tpu.memory_space<vmem>>, vector<1x8x1xf32>
    %8 = vector.shape_cast %7 : vector<1x8x1xf32> to vector<8x1xf32>
    %cst = arith.constant dense<0xFF800000> : vector<8xf32>
    %9 = vector.multi_reduction <maximumf>, %4, %cst [1] : vector<8x128xf32> to vector<8xf32>
    %10 = vector.shape_cast %9 : vector<8xf32> to vector<8x1xf32>
    %11 = vector.broadcast %10 : vector<8x1xf32> to vector<8x128xf32>
    %12 = arith.subf %4, %11 : vector<8x128xf32>
    %13 = math.exp %12 : vector<8x128xf32>
    %cst_9 = arith.constant dense<0.000000e+00> : vector<8xf32>
    %14 = vector.multi_reduction <add>, %13, %cst_9 [1] : vector<8x128xf32> to vector<8xf32>
    %15 = vector.shape_cast %14 : vector<8xf32> to vector<8x1xf32>
    %16 = math.log %15 : vector<8x1xf32>
    %17 = tpu.iota {dimensions = array<i32: 1>} : vector<8x128xi32>
    %18 = vector.broadcast %6 : vector<8x1xi32> to vector<8x128xi32>
    %19 = arith.cmpi eq, %17, %18 : vector<8x128xi32>
    %cst_10 = arith.constant 0.000000e+00 : f32
    %20 = vector.broadcast %cst_10 : f32 to vector<8x128xf32>
    %21 = arith.select %19, %4, %20 : vector<8x128xi1>, vector<8x128xf32>
    %cst_11 = arith.constant dense<0.000000e+00> : vector<8xf32>
    %22 = vector.multi_reduction <add>, %21, %cst_11 [1] : vector<8x128xf32> to vector<8xf32>
    %23 = vector.shape_cast %22 : vector<8xf32> to vector<8x1xf32>
    %24 = arith.addf %10, %16 : vector<8x1xf32>
    %25 = arith.subf %24, %23 : vector<8x1xf32>
    %c0_12 = arith.constant 0 : index
    %c0_13 = arith.constant 0 : index
    %26 = vector.load %arg6[%c0_12, %c0_13] : memref<1x1xf32, #tpu.memory_space<vmem>>, vector<1x1xf32>
    %27 = arith.mulf %25, %8 : vector<8x1xf32>
    %28 = vector.shape_cast %27 : vector<8x1xf32> to vector<1x8x1xf32>
    %cst_14 = arith.constant dense<0.000000e+00> : vector<1xf32>
    %29 = vector.multi_reduction <add>, %28, %cst_14 [1, 2] : vector<1x8x1xf32> to vector<1xf32>
    %30 = vector.shape_cast %29 : vector<1xf32> to vector<1x1x1xf32>
    %31 = vector.extract %30[0, 0, 0] : f32 from vector<1x1x1xf32>
    %32 = vector.broadcast %31 : f32 to vector<1x1xf32>
    %33 = arith.addf %26, %32 : vector<1x1xf32>
    %c0_15 = arith.constant 0 : index
    %c0_16 = arith.constant 0 : index
    %34 = vector.load %arg6[%c0_15, %c0_16] : memref<1x1xf32, #tpu.memory_space<vmem>>, vector<1x1xf32>
    tpu.vector_store %arg6[%c0_15, %c0_16], %33 {strides = array<i32>} : memref<1x1xf32, #tpu.memory_space<vmem>>, vector<1x1xf32>,
    %c0_17 = arith.constant 0 : index
    %c0_18 = arith.constant 0 : index
    %35 = vector.load %arg7[%c0_17, %c0_18] : memref<1x1xf32, #tpu.memory_space<vmem>>, vector<1x1xf32>
    %36 = vector.shape_cast %8 : vector<8x1xf32> to vector<1x8x1xf32>
    %cst_19 = arith.constant dense<0.000000e+00> : vector<1xf32>
    %37 = vector.multi_reduction <add>, %36, %cst_19 [1, 2] : vector<1x8x1xf32> to vector<1xf32>
    %38 = vector.shape_cast %37 : vector<1xf32> to vector<1x1x1xf32>
    %39 = vector.extract %38[0, 0, 0] : f32 from vector<1x1x1xf32>
    %40 = vector.broadcast %39 : f32 to vector<1x1xf32>
    %41 = arith.addf %35, %40 : vector<1x1xf32>
    %c0_20 = arith.constant 0 : index
    %c0_21 = arith.constant 0 : index
    %42 = vector.load %arg7[%c0_20, %c0_21] : memref<1x1xf32, #tpu.memory_space<vmem>>, vector<1x1xf32>
    tpu.vector_store %arg7[%c0_20, %c0_21], %41 {strides = array<i32>} : memref<1x1xf32, #tpu.memory_space<vmem>>, vector<1x1xf32>,
    %c0_i32_22 = arith.constant 0 : i32
    %43 = arith.cmpi eq, %arg1, %c0_i32_22 : i32
    %44 = arith.extui %43 : i1 to i32
    %c0_i32_23 = arith.constant 0 : i32
    %45 = arith.cmpi ne, %44, %c0_i32_23 : i32
    scf.if %45 {
      %c0_24 = arith.constant 0 : index
      %c0_25 = arith.constant 0 : index
      %46 = vector.load %arg6[%c0_24, %c0_25] : memref<1x1xf32, #tpu.memory_space<vmem>>, vector<1x1xf32>
      %c0_26 = arith.constant 0 : index
      %c0_27 = arith.constant 0 : index
      %47 = vector.load %arg7[%c0_26, %c0_27] : memref<1x1xf32, #tpu.memory_space<vmem>>, vector<1x1xf32>
      %48 = arith.divf %46, %47 : vector<1x1xf32>
      %c0_28 = arith.constant 0 : index
      %c0_29 = arith.constant 0 : index
      %c0_30 = arith.constant 0 : index
      %49 = vector.load %arg5[%c0_28, %c0_29, %c0_30] : memref<1x1x1xf32, #tpu.memory_space<vmem>>, vector<1x1x1xf32>
      %50 = vector.shape_cast %49 : vector<1x1x1xf32> to vector<1x1xf32>
      %51 = vector.shape_cast %48 : vector<1x1xf32> to vector<1x1x1xf32>
      tpu.vector_store %arg5[%c0_28, %c0_29, %c0_30], %51 {strides = array<i32>} : memref<1x1x1xf32, #tpu.memory_space<vmem>>, vector<1x1x1xf32>,
    } else {
    }
    return
  }
  func.func @transform_0(%arg0: i32, %arg1: i32) -> (i32, i32, i32) {
    %c0_i32 = arith.constant 0 : i32
    %c0_i32_0 = arith.constant 0 : i32
    return %arg0, %arg1, %c0_i32 : i32, i32, i32
  }
  func.func @transform_1(%arg0: i32, %arg1: i32) -> (i32, i32, i32) {
    %c0_i32 = arith.constant 0 : i32
    %c0_i32_0 = arith.constant 0 : i32
    return %arg0, %arg1, %c0_i32 : i32, i32, i32
  }
  func.func @transform_2(%arg0: i32, %arg1: i32) -> (i32, i32, i32) {
    %c0_i32 = arith.constant 0 : i32
    %c0_i32_0 = arith.constant 0 : i32
    return %arg0, %arg1, %c0_i32 : i32, i32, i32
  }
  func.func @transform_3(%arg0: i32, %arg1: i32) -> (i32, i32, i32) {
    %c0_i32 = arith.constant 0 : i32
    %c0_i32_0 = arith.constant 0 : i32
    %c0_i32_1 = arith.constant 0 : i32
    return %arg0, %c0_i32, %c0_i32_0 : i32, i32, i32
  }
}

</mosaic_0001>

<bundles_post_ra>
// kernel: tpu_custom_call.1
= control target key start
LH: loop header
LB: loop body
LE: loop exit
PB: predicated region body
PF: predicated region fallthrough
CT: control target
= control target key end

     0   :  { %s493_s12 = smov 0   ;;  %s495_s13 = smov 0   ;;  %s541_s0 = inlined_call_operand.vmem [shape: f32[2,8,128], index: 0, kind: input, shape index: {}]   ;;  %s542_s1 = inlined_call_operand.vmem [shape: s32[2,8,1], index: 1, kind: input, shape index: {}]   ;;  %s543_s2 = inlined_call_operand.vmem [shape: f32[2,8,1], index: 2, kind: input, shape index: {}]   ;;  %s544_s3 = inlined_call_operand.vmem [shape: f32[2,1,1], index: 3, kind: output, shape index: {}]  }
   0x1   :  { %s497_s14 = smov 0  }
   0x2 LB: > { %s25_s15 = sadd.s32 1, %s465_s13  ;;  %p404_p0 = scmp.ge.s32.totalorder %s469_s14, 1  ;;  %s469_s14 = sphi %s497_s14, %s13_s14   ;;  %s465_s13 = sphi %s495_s13, %s546_s13   ;;  %s461_s12 = sphi %s493_s12, %s545_s12  }
   0x3   : > { %p27_p1 = scmp.ge.s32.totalorder %s25_s15, 2  ;;  %p181_p2 = scmp.lt.s32.totalorder %s469_s14, 3 }
   0x5   : > { %s548_s15 = smov (%p27_p1, %s25_s15), 0  ;;  %p182_p3 = pnand %p404_p0, %p181_p2 }
   0x6   : > { %p219_p4 = scmp.lt.s32.totalorder (!%p182_p3), %s461_s12, 1 }
   0x7   : > { %185 = sbr.rel (%p182_p3) target bundleno = 565 (0x235), region = 32 }
   0xc   : > { %v471_v0 = vmov 0   ;;  %s550_s12 = smov (!%p219_p4, %s461_s12), 1  ;;  %v262_v6 = vlaneseq  ;;  %vm275_vm1 = vcmask 7168   ;;  %vm247_vm2 = vcmask 0  }
   0xd   : > { %440 = vset.pattern.permute.xlu0 %v471_v0  ;;  %s405_s16 = sshll.u32 %s550_s12, 3  ;;  %v472_v21 = vmov 0.0   ;;  %s242_s30 = scalar_lea.vmem %s544_s3, %s550_s12 }
   0xe   : > { %s225_s19 = scalar_lea.vmem %s541_s0, %s405_s16  ;;  %s232_s22 = scalar_lea.vmem %s542_s1, %s405_s16  ;;  %v263_v7 = vand.u32 127, %v262_v6  ;;  %248 = vst.msk [vmem:[#allocation2] sm:$0x1] %vm247_vm2, %v472_v21  ;;  %249 = vst.msk [vmem:[#allocation3] sm:$0x1] %vm247_vm2, %v472_v21 }
   0xf   : > { %v250_v1 = vld [vmem:[%s225_s19] sm:$0xff]  ;;  %s239_s25 = scalar_lea.vmem %s543_s2, %s405_s16 }
  0x10   : > { %253 = vmax.xlane.f32.xlu0 %v250_v1  ;;  %v251_v2 = vld [vmem:[%s232_s22] sm:$0xff] }
  0x11   : > { %v252_v16 = vld [vmem:[%s239_s25] sm:$0xff] }
  0x12   : > { %v291_v20 = vsel %vm275_vm1, %v252_v16, 0.0 }
  0x15   : > { %v273_v36 = vld [vmem:[#allocation2] sm:$0x1]  ;;  %v290_v39 = vld [vmem:[#allocation3] sm:$0x1] }
  0x26   : > { %265 = vperm.xlu0 %440, %v251_v2  }
  0x99   : > { %v254_v3 = vpop.xlane.xlu0 %253 }
  0x9a   : > { %v255_v4 = vsub.f32 %v250_v1, %v254_v3 }
  0x9c   : > { %v256_v5 = vmul.f32 1.442695, %v255_v4 }
  0x9e   : > { %441 = vpow2.f32 %v256_v5 }
  0xa1   : > { %v266_v8 = vpop.permute.xlu0 %265 }
  0xa2   : > { %vm267_vm0 = vcmp.eq.s32.totalorder %v263_v7, %v266_v8 }
  0xa3   : > { %v268_v10 = vsel %vm267_vm0, %v250_v1, 0.0 }
  0xab   : > { %v442_v9 = vpop.eup %441 }
  0xac   : > { %258 = vadd.xlane.f32.xlu1 %v442_v9 }
  0xb0   : > { %269 = vadd.xlane.f32.xlu1 %v268_v10 }
 0x135   : > { %v259_v11 = vpop.xlane.xlu1 %258 }
 0x136   : > { %443 = vlog2.f32 %v259_v11 }
 0x139   : > { %v270_v14 = vpop.xlane.xlu1 %269 }
 0x143   : > { %v444_v12 = vpop.eup %443 }
 0x144   : > { %v261_v13 = vmul.f32 0.6931472, %v444_v12 }
 0x146   : > { %v271_v15 = vadd.f32 %v261_v13, %v254_v3 }
 0x148   : > { %v272_v17 = vsub.f32 %v271_v15, %v270_v14 }
 0x14a   : > { %v274_v18 = vmul.f32 %v272_v17, %v252_v16 }
 0x14c   : > { %v276_v19 = vsel %vm275_vm1, %v274_v18, 0.0 }
 0x14d   : > { %277 = vadd.xlane.f32.xlu1 %v276_v19 }
 0x151   : > { %292 = vadd.xlane.f32.xlu1 %v291_v20 }
 0x1d6   : > { %v278_v22 = vpop.xlane.xlu1 %277 }
 0x1d7   : > { %v279_v23 = vrot.slane %v278_v22, 4 }
 0x1d9   : > { %v280_v24 = vadd.f32 %v279_v23, %v278_v22 }
 0x1da   : > { %v293_v25 = vpop.xlane.xlu1 %292 }
 0x1db   : > { %v281_v26 = vrot.slane %v280_v24, 2  ;;  %v294_v27 = vrot.slane %v293_v25, 4 }
 0x1dd   : > { %v295_v28 = vadd.f32 %v294_v27, %v293_v25  ;;  %v282_v29 = vadd.f32 %v281_v26, %v280_v24 }
 0x1df   : > { %v296_v30 = vrot.slane %v295_v28, 2  ;;  %v283_v31 = vrot.slane %v282_v29, 1 }
 0x1e1   : > { %v297_v32 = vadd.f32 %v296_v30, %v295_v28  ;;  %v284_v33 = vadd.f32 %v283_v31, %v282_v29 }
 0x1e3   : > { %410 = vpush %v284_v33  ;;  %v298_v34 = vrot.slane %v297_v32, 1 }
 0x1e5   : > { %v299_v35 = vadd.f32 %v298_v34, %v297_v32 }
 0x1e7   : > { %412 = vpush %v299_v35 }
 0x214   : > { %s411_s26 = spop %410 }
 0x215   : > { %v286_v37 = vstv %s411_s26 }
 0x216   : > { %v287_v38 = vadd.f32 %v286_v37, %v273_v36 }
 0x218   : > { %289 = vst.msk [vmem:[#allocation2] sm:$0x1] %vm247_vm2, %v287_v38  ;;  %s413_s27 = spop %412 }
 0x219   : > { %v301_v40 = vstv %s413_s27 }
 0x21a   : > { %v302_v41 = vadd.f32 %v301_v40, %v290_v39 }
 0x21c   : > { %303 = vst.msk [vmem:[#allocation3] sm:$0x1] %vm247_vm2, %v302_v41 }
 0x21f   : > { %v307_v44 = vld [vmem:[#allocation2] sm:$0x1] }
 0x223   : > { %v308_v42 = vld [vmem:[#allocation3] sm:$0x1] }
 0x224   : > { %445 = vrcp.f32 %v308_v42 }
 0x231   : > { %v446_v43 = vpop.eup %445 }
 0x232   : > { %v310_v45 = vmul.f32 %v446_v43, %v307_v44 }
 0x234   : > { %311 = vst.msk [vmem:[%s242_s30] sm:$0x1] %vm247_vm2, %v310_v45 }
 0x235 PF: > { %s13_s14 = sadd.s32 1, %s469_s14   ;;  %s545_s12 = smov %s465_s13 }
 0x236   : > { %p10_p5 = scmp.ge.s32.totalorder %s13_s14, 4   ;;  %s546_s13 = smov %s548_s15 }
 0x238   :  { %12 = sbr.rel (!%p10_p5) target bundleno = 2 (0x2), region = 76 }

</bundles_post_ra>
